<compile_context>
chip_gen: v7x
topology: tpu7x:2x2x1
jax: 0.10.0
libtpu: 0.0.40
codegen_flags: <defaults>
</compile_context>

<pallas_src>
import math

import jax
import jax.numpy as jnp
from jax.experimental import pallas as pl
from jax.experimental.pallas import tpu as pltpu


def _make_kernel(S, E, Bt, compute_dtype, emit_attn):
    exact = (jnp.dtype(compute_dtype) == jnp.dtype(jnp.float32))

    def kernel(x_ref, wqkv_ref, bqkv_ref, wo_ref, bo_ref, out_ref, *rest):
        # x_ref: (Bt*S, E) in the caller's dtype; cast on the VPU (free slot)
        # instead of a separate HBM-roundtrip cast in the wrapper.
        xf = x_ref[...].astype(compute_dtype)

        # Fused Q/K/V projection: one (Bt*S, E) @ (E, 3E) MXU pass, f32 accum.
        qkv = jnp.dot(xf, wqkv_ref[...],
                      preferred_element_type=jnp.float32) + bqkv_ref[...]
        q = qkv[:, 0 * E:1 * E].reshape(Bt, S, E)
        k = qkv[:, 1 * E:2 * E].reshape(Bt, S, E)
        v = qkv[:, 2 * E:3 * E].reshape(Bt, S, E)

        # Scores: contraction over the last dim of both operands (no k.T).
        # NOTE: the 1/sqrt(E) scale is already folded into the Q columns of
        # wqkv_ref / bqkv_ref by the wrapper -- no per-element multiply here.
        scores = jnp.einsum(
            "bqe,bke->bqk", q.astype(compute_dtype), k.astype(compute_dtype),
            preferred_element_type=jnp.float32)

        # Numerically-stable softmax in f32.
        m = jnp.max(scores, axis=-1, keepdims=True)
        p = jnp.exp(scores - m)
        denom = jnp.sum(p, axis=-1, keepdims=True)
        if exact:
            attn = p / denom                                   # exact rows-sum-to-1
        else:
            attn = p * pl.reciprocal(denom, approx=True)       # EUP, ~free slot

        # Dropout is identity at inference time.
        # TODO(synk): add pltpu.prng_seed/prng_random_bits dropout mask for
        # training mode.

        # TODO(synk): for large S, replace the materialized (Bt,S,S) scores with
        # a flash-style KV-tiled online softmax (second 'arbitrary' grid axis).
        ctx = jnp.einsum(
            "bqk,bke->bqe", attn.astype(compute_dtype), v.astype(compute_dtype),
            preferred_element_type=jnp.float32)

        out = jnp.dot(ctx.reshape(Bt * S, E).astype(compute_dtype),
                      wo_ref[...],
                      preferred_element_type=jnp.float32) + bo_ref[...]

        out_ref[...] = out.astype(out_ref.dtype)
        if emit_attn:
            rest[0][...] = attn.astype(rest[0].dtype)

    return kernel


def _mxu_row_target():
    """Target M rows per grid step: 256 for the 256x256 MXUs (v6e/v7x),
    128 for the 128x128 MXUs (v2-v5)."""
    try:
        kind = jax.devices()[0].device_kind.lower()
    except Exception:
        return 256
    if any(v in kind for v in ("v2", "v3", "v4", "v5")):
        return 128
    return 256


def _pick_batch_tile(B, S, target_rows):
    """Fold batch elements into the matmul M dim.

    Constraints:
      - (Bt*S) % 8 == 0 unless the block covers all rows (BlockSpec rule),
      - keep at least 2 grid steps when B >= 2 (v7x has 2 TensorCores),
      - don't exceed ~target_rows rows per step (MXU fill vs VMEM).
    """
    def ok_rows(d):
        return (d * S) % 8 == 0 or d == B

    cands = [d for d in range(1, B + 1) if B % d == 0 and ok_rows(d)]
    # Preferred: row-aligned, >=2 grid steps, within the row target.
    pref = [d for d in cands
            if (B == 1 or B // d >= 2) and d * S <= max(target_rows, S)]
    if pref:
        return max(pref)
    # Next: row-aligned and within the row target (may collapse grid to 1).
    pref = [d for d in cands if d * S <= max(target_rows, S)]
    if pref:
        return max(pref)
    return max(cands) if cands else B


def _vmem_limit_bytes(Bt, S, E, x_dtype, out_dtype, compute_dtype,
                      return_attn, buffered_weights):
    """Derive a VMEM budget from the real footprint instead of hardcoding."""
    rows = Bt * S
    bx = jnp.dtype(x_dtype).itemsize
    bo = jnp.dtype(out_dtype).itemsize
    bc = jnp.dtype(compute_dtype).itemsize

    # Pipelined I/O tiles (double-buffered by default).
    io = 2 * rows * E * bx + 2 * rows * E * bo
    if return_attn:
        io += 2 * Bt * S * S * bo
    # Grid-invariant weights/biases (single-buffered when Buffered(1) applies).
    wfac = 1 if buffered_weights else 2
    weights = wfac * ((3 * E * E + E * E) * bc + 4 * E * 4)
    # In-kernel temporaries: qkv(f32) + q/k/v(compute) + scores+p(f32) + ctx/out(f32).
    temps = (4 * rows * 3 * E + 3 * rows * E * bc
             + 2 * 4 * Bt * S * S + 2 * 4 * rows * E)
    need = io + weights + temps + (8 << 20)     # margin for Mosaic scratch

    try:
        phys = pltpu.get_tpu_info().vmem_capacity_bytes
    except Exception:
        phys = 64 << 20                          # conservative (v7x) fallback
    cap = min(int(phys * 7 // 8), 112 << 20)     # never request all of VMEM
    return int(min(max(need, 32 << 20), cap))


def single_head_self_attention(x, params, *, compute_dtype=jnp.bfloat16,
                               return_attn=True):
    """x: (B, S, E). params: wq,bq,wk,bk,wv,bv,wo,bo in PyTorch convention
    (W[out, in], b[out]). Returns (out, attn) like the nn.Module (eval mode),
    or just out if return_attn=False (drops the O(B*S^2) HBM writeback)."""
    B, S, E = x.shape
    out_dtype = x.dtype
    scale = 1.0 / math.sqrt(E)

    # One-time layout plumbing in the wrapper (not per grid step):
    #  - transpose weights so the kernel computes x @ W_t (no in-kernel .T),
    #  - fuse Q/K/V weights/biases into one (E, 3E) / (1, 3E) operand,
    #  - fold the 1/sqrt(E) softmax scale into the Q columns (weights + bias),
    #  - cast MXU weight operands to the compute dtype (biases stay f32; they
    #    are added after f32 accumulation).
    wqkv_t = jnp.concatenate(
        [params["wq"].T * scale, params["wk"].T, params["wv"].T], axis=1
    ).astype(compute_dtype)                                        # (E, 3E)
    bqkv = jnp.concatenate(
        [params["bq"] * scale, params["bk"], params["bv"]]
    ).reshape(1, 3 * E).astype(jnp.float32)                        # (1, 3E)
    wo_t = params["wo"].T.astype(compute_dtype)                    # (E, E)
    bo = params["bo"].reshape(1, E).astype(jnp.float32)            # (1, E)

    Bt = _pick_batch_tile(B, S, _mxu_row_target())
    nb = B // Bt
    # x stays in its original dtype; the kernel casts on the VPU.
    x_flat = x.reshape(B * S, E)

    # TODO(synk): for large E, tile the fused projection over the 3E output
    # columns (extra grid axis) instead of loading the whole (E,3E) block; and
    # pad E to a multiple of 128 if it isn't, to keep stores lane-dense.

    kernel = _make_kernel(S, E, Bt, compute_dtype, return_attn)

    flops = (2 * B * S * E * 3 * E          # fused QKV projection
             + 4 * B * S * S * E            # scores + context
             + 2 * B * S * E * E)           # output projection
    bytes_accessed = (x_flat.size * x_flat.dtype.itemsize
                      + wqkv_t.size * wqkv_t.dtype.itemsize
                      + wo_t.size * wo_t.dtype.itemsize
                      + 4 * E * 4
                      + B * S * E * jnp.dtype(out_dtype).itemsize
                      + (B * S * S * jnp.dtype(out_dtype).itemsize
                         if return_attn else 0))
    cost = pl.CostEstimate(flops=flops, transcendentals=B * S * S,
                           bytes_accessed=bytes_accessed)

    def _call(buffered_weights):
        # Grid-invariant operands: single-buffer to reclaim VMEM (~8E^2 bytes).
        wkw = dict(pipeline_mode=pl.Buffered(1)) if buffered_weights else {}
        in_specs = [
            pl.BlockSpec((Bt * S, E), lambda b: (b, 0)),           # x rows
            pl.BlockSpec((E, 3 * E), lambda b: (0, 0), **wkw),     # fused Wqkv^T
            pl.BlockSpec((1, 3 * E), lambda b: (0, 0), **wkw),     # fused bias
            pl.BlockSpec((E, E), lambda b: (0, 0), **wkw),         # Wo^T
            pl.BlockSpec((1, E), lambda b: (0, 0), **wkw),         # bo
        ]
        if return_attn:
            out_shape = (jax.ShapeDtypeStruct((B * S, E), out_dtype),
                         jax.ShapeDtypeStruct((B, S, S), out_dtype))
            out_specs = [pl.BlockSpec((Bt * S, E), lambda b: (b, 0)),
                         pl.BlockSpec((Bt, S, S), lambda b: (b, 0, 0))]
        else:
            out_shape = jax.ShapeDtypeStruct((B * S, E), out_dtype)
            out_specs = pl.BlockSpec((Bt * S, E), lambda b: (b, 0))

        return pl.pallas_call(
            kernel,
            out_shape=out_shape,
            grid_spec=pltpu.PrefetchScalarGridSpec(
                num_scalar_prefetch=0,
                grid=(nb,),
                in_specs=in_specs,
                out_specs=out_specs,
            ),
            compiler_params=pltpu.CompilerParams(
                dimension_semantics=("parallel",),
                vmem_limit_bytes=_vmem_limit_bytes(
                    Bt, S, E, x.dtype, out_dtype, compute_dtype,
                    return_attn, buffered_weights),
            ),
            cost_estimate=cost,
        )(x_flat, wqkv_t, bqkv, wo_t, bo)

    try:
        results = _call(buffered_weights=True)
    except Exception:
        # pipeline_mode=pl.Buffered(1) unsupported on this jax/Mosaic build:
        # fall back to default double-buffered (grid-invariant) weight blocks.
        results = _call(buffered_weights=False)

    if return_attn:
        out_flat, attn = results
        return out_flat.reshape(B, S, E), attn
    return results.reshape(B, S, E)


def init_params(key, embed_dim):
    """Deterministic init mimicking nn.Linear shapes: W (out,in), b (out,)."""
    keys = jax.random.split(key, 8)
    bound = 1.0 / math.sqrt(embed_dim)

    def lin(kw, kb):
        w = jax.random.uniform(kw, (embed_dim, embed_dim), jnp.float32, -bound, bound)
        b = jax.random.uniform(kb, (embed_dim,), jnp.float32, -bound, bound)
        return w, b

    wq, bq = lin(keys[0], keys[1])
    wk, bk = lin(keys[2], keys[3])
    wv, bv = lin(keys[4], keys[5])
    wo, bo = lin(keys[6], keys[7])
    return dict(wq=wq, bq=bq, wk=wk, bk=bk, wv=wv, bv=bv, wo=wo, bo=bo)


def _reference(x, p):
    """Pure-JAX reference for correctness check."""
    E = x.shape[-1]
    q = x @ p["wq"].T + p["bq"]
    k = x @ p["wk"].T + p["bk"]
    v = x @ p["wv"].T + p["bv"]
    scores = jnp.einsum("bqe,bke->bqk", q, k) / math.sqrt(E)
    attn = jax.nn.softmax(scores, axis=-1)
    ctx = jnp.einsum("bqk,bke->bqe", attn, v)
    out = ctx @ p["wo"].T + p["bo"]
    return out, attn


if __name__ == "__main__":
    B, S, E = 2, 8, 32
    key = jax.random.PRNGKey(0)
    k_x, k_p = jax.random.split(key)
    x = jax.random.normal(k_x, (B, S, E), jnp.float32)
    params = init_params(k_p, E)

    ref_out, ref_attn = _reference(x, params)

    # bf16 MXU path (default) -- f32 accumulation, approx softmax reciprocal.
    out, attn = single_head_self_attention(x, params)
    out = jax.block_until_ready(out)
    attn = jax.block_until_ready(attn)
    assert jnp.allclose(out, ref_out, atol=2e-2, rtol=2e-2), "bf16 output mismatch"
    assert jnp.allclose(attn, ref_attn, atol=2e-2, rtol=2e-2), "bf16 attn mismatch"

    # f32 path for a tight numerical check (exact softmax normalization).
    out32, attn32 = single_head_self_attention(x, params,
                                               compute_dtype=jnp.float32)
    out32 = jax.block_until_ready(out32)
    attn32 = jax.block_until_ready(attn32)
    assert jnp.allclose(out32, ref_out, atol=1e-3, rtol=1e-3), "f32 output mismatch"
    assert jnp.allclose(attn32, ref_attn, atol=1e-3, rtol=1e-3), "f32 attn mismatch"

    # Production path: drop the O(B*S^2) attention-weights writeback entirely.
    out_only = single_head_self_attention(x, params, return_attn=False)
    out_only = jax.block_until_ready(out_only)
    assert jnp.allclose(out_only, ref_out, atol=2e-2, rtol=2e-2), "no-attn output mismatch"

    print("KERNEL_OK")
</pallas_src>

<mosaic_0001>
module attributes {stable_mosaic.version = 11 : i64} {
  func.func @kernel(%arg0: i32, %arg1: memref<8x32xf32, #tpu.memory_space<vmem>>, %arg2: memref<32x96xbf16, #tpu.memory_space<vmem>>, %arg3: memref<1x96xf32, #tpu.memory_space<vmem>>, %arg4: memref<32x32xbf16, #tpu.memory_space<vmem>>, %arg5: memref<1x32xf32, #tpu.memory_space<vmem>>, %arg6: memref<8x32xf32, #tpu.memory_space<vmem>>, %arg7: memref<1x8x8xf32, #tpu.memory_space<vmem>>) attributes {dimension_semantics = [#tpu.dimension_semantics<parallel>], iteration_bounds = array<i64: 2>, scalar_prefetch = 0 : i64, scratch_operands = 0 : i64, tpu.core_type = #tpu.core_type<tc>, window_params = [{transform_indices = @transform_0, window_bounds = array<i64: 8, 32>}, {pipeline_mode = #tpu.pipeline_mode<synchronous>, transform_indices = @transform_1, window_bounds = array<i64: 32, 96>}, {pipeline_mode = #tpu.pipeline_mode<synchronous>, transform_indices = @transform_2, window_bounds = array<i64: 1, 96>}, {pipeline_mode = #tpu.pipeline_mode<synchronous>, transform_indices = @transform_3, window_bounds = array<i64: 32, 32>}, {pipeline_mode = #tpu.pipeline_mode<synchronous>, transform_indices = @transform_4, window_bounds = array<i64: 1, 32>}, {transform_indices = @transform_5, window_bounds = array<i64: 8, 32>}, {transform_indices = @transform_6, window_bounds = array<i64: 1, 8, 8>}]} {
    %c0 = arith.constant 0 : index
    %c0_0 = arith.constant 0 : index
    %0 = vector.load %arg1[%c0, %c0_0] : memref<8x32xf32, #tpu.memory_space<vmem>>, vector<8x32xf32>
    %1 = arith.truncf %0 : vector<8x32xf32> to vector<8x32xbf16>
    %c0_1 = arith.constant 0 : index
    %c0_2 = arith.constant 0 : index
    %2 = vector.load %arg2[%c0_1, %c0_2] : memref<32x96xbf16, #tpu.memory_space<vmem>>, vector<32x96xbf16>
    %cst = arith.constant dense<0.000000e+00> : vector<8x96xf32>
    %3 = tpu.matmul %1, %2, %cst {dimension_numbers = #tpu.dot_dimension_numbers<[1], [0], [0], [1], [0, 0, 1, 1], [], []>} : vector<8x32xbf16>, vector<32x96xbf16>, vector<8x96xf32> -> vector<8x96xf32>
    %c0_3 = arith.constant 0 : index
    %c0_4 = arith.constant 0 : index
    %4 = vector.load %arg3[%c0_3, %c0_4] : memref<1x96xf32, #tpu.memory_space<vmem>>, vector<1x96xf32>
    %5 = vector.broadcast %4 : vector<1x96xf32> to vector<8x96xf32>
    %6 = arith.addf %3, %5 : vector<8x96xf32>
    %7 = vector.extract_strided_slice %6 {offsets = [0, 0], sizes = [8, 32], strides = [1, 1]} : vector<8x96xf32> to vector<8x32xf32>
    %8 = vector.shape_cast %7 : vector<8x32xf32> to vector<1x8x32xf32>
    %9 = vector.extract_strided_slice %6 {offsets = [0, 32], sizes = [8, 32], strides = [1, 1]} : vector<8x96xf32> to vector<8x32xf32>
    %10 = vector.shape_cast %9 : vector<8x32xf32> to vector<1x8x32xf32>
    %11 = vector.extract_strided_slice %6 {offsets = [0, 64], sizes = [8, 32], strides = [1, 1]} : vector<8x96xf32> to vector<8x32xf32>
    %12 = vector.shape_cast %11 : vector<8x32xf32> to vector<1x8x32xf32>
    %13 = arith.truncf %8 : vector<1x8x32xf32> to vector<1x8x32xbf16>
    %14 = arith.truncf %10 : vector<1x8x32xf32> to vector<1x8x32xbf16>
    "tpu.trace_start"() <{level = 10 : i32, message = "bqe,bke->bqk"}> : () -> ()
    %cst_5 = arith.constant dense<0.000000e+00> : vector<1x8x8xf32>
    %15 = tpu.matmul %13, %14, %cst_5 {dimension_numbers = #tpu.dot_dimension_numbers<[2], [2], [1], [1], [0, 0, 0, 1, 1, 1], [0], [0]>} : vector<1x8x32xbf16>, vector<1x8x32xbf16>, vector<1x8x8xf32> -> vector<1x8x8xf32>
    "tpu.trace_stop"() : () -> ()
    %cst_6 = arith.constant dense<0xFF800000> : vector<1x8xf32>
    %16 = vector.multi_reduction <maximumf>, %15, %cst_6 [2] : vector<1x8x8xf32> to vector<1x8xf32>
    %17 = vector.shape_cast %16 : vector<1x8xf32> to vector<1x8x1xf32>
    %18 = vector.broadcast %17 : vector<1x8x1xf32> to vector<1x8x8xf32>
    %19 = arith.subf %15, %18 : vector<1x8x8xf32>
    %20 = math.exp %19 : vector<1x8x8xf32>
    %cst_7 = arith.constant dense<0.000000e+00> : vector<1x8xf32>
    %21 = vector.multi_reduction <add>, %20, %cst_7 [2] : vector<1x8x8xf32> to vector<1x8xf32>
    %22 = vector.shape_cast %21 : vector<1x8xf32> to vector<1x8x1xf32>
    %23 = tpu.reciprocal %22 {approx = true} : vector<1x8x1xf32> -> vector<1x8x1xf32>
    %24 = vector.broadcast %23 : vector<1x8x1xf32> to vector<1x8x8xf32>
    %25 = arith.mulf %20, %24 : vector<1x8x8xf32>
    %26 = arith.truncf %25 : vector<1x8x8xf32> to vector<1x8x8xbf16>
    %27 = arith.truncf %12 : vector<1x8x32xf32> to vector<1x8x32xbf16>
    "tpu.trace_start"() <{level = 10 : i32, message = "bqk,bke->bqe"}> : () -> ()
    %cst_8 = arith.constant dense<0.000000e+00> : vector<1x8x32xf32>
    %28 = tpu.matmul %26, %27, %cst_8 {dimension_numbers = #tpu.dot_dimension_numbers<[2], [1], [1], [2], [0, 0, 0, 1, 1, 2], [0], [0]>} : vector<1x8x8xbf16>, vector<1x8x32xbf16>, vector<1x8x32xf32> -> vector<1x8x32xf32>
    "tpu.trace_stop"() : () -> ()
    %29 = vector.shape_cast %28 : vector<1x8x32xf32> to vector<8x32xf32>
    %30 = arith.truncf %29 : vector<8x32xf32> to vector<8x32xbf16>
    %c0_9 = arith.constant 0 : index
    %c0_10 = arith.constant 0 : index
    %31 = vector.load %arg4[%c0_9, %c0_10] : memref<32x32xbf16, #tpu.memory_space<vmem>>, vector<32x32xbf16>
    %cst_11 = arith.constant dense<0.000000e+00> : vector<8x32xf32>
    %32 = tpu.matmul %30, %31, %cst_11 {dimension_numbers = #tpu.dot_dimension_numbers<[1], [0], [0], [1], [0, 0, 1, 1], [], []>} : vector<8x32xbf16>, vector<32x32xbf16>, vector<8x32xf32> -> vector<8x32xf32>
    %c0_12 = arith.constant 0 : index
    %c0_13 = arith.constant 0 : index
    %33 = vector.load %arg5[%c0_12, %c0_13] : memref<1x32xf32, #tpu.memory_space<vmem>>, vector<1x32xf32>
    %34 = vector.broadcast %33 : vector<1x32xf32> to vector<8x32xf32>
    %35 = arith.addf %32, %34 : vector<8x32xf32>
    %c0_14 = arith.constant 0 : index
    %c0_15 = arith.constant 0 : index
    %36 = vector.load %arg6[%c0_14, %c0_15] : memref<8x32xf32, #tpu.memory_space<vmem>>, vector<8x32xf32>
    tpu.vector_store %arg6[%c0_14, %c0_15], %35 {strides = array<i32>} : memref<8x32xf32, #tpu.memory_space<vmem>>, vector<8x32xf32>,
    %c0_16 = arith.constant 0 : index
    %c0_17 = arith.constant 0 : index
    %c0_18 = arith.constant 0 : index
    %37 = vector.load %arg7[%c0_16, %c0_17, %c0_18] : memref<1x8x8xf32, #tpu.memory_space<vmem>>, vector<1x8x8xf32>
    tpu.vector_store %arg7[%c0_16, %c0_17, %c0_18], %25 {strides = array<i32>} : memref<1x8x8xf32, #tpu.memory_space<vmem>>, vector<1x8x8xf32>,
    return
  }
  func.func @transform_0(%arg0: i32) -> (i32, i32) {
    %c0_i32 = arith.constant 0 : i32
    %c0_i32_0 = arith.constant 0 : i32
    return %arg0, %c0_i32 : i32, i32
  }
  func.func @transform_1(%arg0: i32) -> (i32, i32) {
    %c0_i32 = arith.constant 0 : i32
    %c0_i32_0 = arith.constant 0 : i32
    %c0_i32_1 = arith.constant 0 : i32
    return %c0_i32, %c0_i32_0 : i32, i32
  }
  func.func @transform_2(%arg0: i32) -> (i32, i32) {
    %c0_i32 = arith.constant 0 : i32
    %c0_i32_0 = arith.constant 0 : i32
    %c0_i32_1 = arith.constant 0 : i32
    return %c0_i32, %c0_i32_0 : i32, i32
  }
  func.func @transform_3(%arg0: i32) -> (i32, i32) {
    %c0_i32 = arith.constant 0 : i32
    %c0_i32_0 = arith.constant 0 : i32
    %c0_i32_1 = arith.constant 0 : i32
    return %c0_i32, %c0_i32_0 : i32, i32
  }
  func.func @transform_4(%arg0: i32) -> (i32, i32) {
    %c0_i32 = arith.constant 0 : i32
    %c0_i32_0 = arith.constant 0 : i32
    %c0_i32_1 = arith.constant 0 : i32
    return %c0_i32, %c0_i32_0 : i32, i32
  }
  func.func @transform_5(%arg0: i32) -> (i32, i32) {
    %c0_i32 = arith.constant 0 : i32
    %c0_i32_0 = arith.constant 0 : i32
    return %arg0, %c0_i32 : i32, i32
  }
  func.func @transform_6(%arg0: i32) -> (i32, i32, i32) {
    %c0_i32 = arith.constant 0 : i32
    %c0_i32_0 = arith.constant 0 : i32
    %c0_i32_1 = arith.constant 0 : i32
    return %arg0, %c0_i32, %c0_i32_0 : i32, i32, i32
  }
}

module attributes {stable_mosaic.version = 11 : i64} {
  func.func @kernel(%arg0: i32, %arg1: memref<8x32xf32, #tpu.memory_space<vmem>>, %arg2: memref<32x96xbf16, #tpu.memory_space<vmem>>, %arg3: memref<1x96xf32, #tpu.memory_space<vmem>>, %arg4: memref<32x32xbf16, #tpu.memory_space<vmem>>, %arg5: memref<1x32xf32, #tpu.memory_space<vmem>>, %arg6: memref<8x32xf32, #tpu.memory_space<vmem>>, %arg7: memref<1x8x8xf32, #tpu.memory_space<vmem>>) attributes {dimension_semantics = [#tpu.dimension_semantics<parallel>], iteration_bounds = array<i64: 2>, scalar_prefetch = 0 : i64, scratch_operands = 0 : i64, tpu.core_type = #tpu.core_type<tc>, window_params = [{transform_indices = @transform_0, window_bounds = array<i64: 8, 32>}, {pipeline_mode = #tpu.pipeline_mode<synchronous>, transform_indices = @transform_1, window_bounds = array<i64: 32, 96>}, {pipeline_mode = #tpu.pipeline_mode<synchronous>, transform_indices = @transform_2, window_bounds = array<i64: 1, 96>}, {pipeline_mode = #tpu.pipeline_mode<synchronous>, transform_indices = @transform_3, window_bounds = array<i64: 32, 32>}, {pipeline_mode = #tpu.pipeline_mode<synchronous>, transform_indices = @transform_4, window_bounds = array<i64: 1, 32>}, {transform_indices = @transform_5, window_bounds = array<i64: 8, 32>}, {transform_indices = @transform_6, window_bounds = array<i64: 1, 8, 8>}]} {
    %c0 = arith.constant 0 : index
    %c0_0 = arith.constant 0 : index
    %0 = vector.load %arg1[%c0, %c0_0] : memref<8x32xf32, #tpu.memory_space<vmem>>, vector<8x32xf32>
    %1 = arith.truncf %0 : vector<8x32xf32> to vector<8x32xbf16>
    %c0_1 = arith.constant 0 : index
    %c0_2 = arith.constant 0 : index
    %2 = vector.load %arg2[%c0_1, %c0_2] : memref<32x96xbf16, #tpu.memory_space<vmem>>, vector<32x96xbf16>
    %cst = arith.constant dense<0.000000e+00> : vector<8x96xf32>
    %3 = tpu.matmul %1, %2, %cst {dimension_numbers = #tpu.dot_dimension_numbers<[1], [0], [0], [1], [0, 0, 1, 1], [], []>} : vector<8x32xbf16>, vector<32x96xbf16>, vector<8x96xf32> -> vector<8x96xf32>
    %c0_3 = arith.constant 0 : index
    %c0_4 = arith.constant 0 : index
    %4 = vector.load %arg3[%c0_3, %c0_4] : memref<1x96xf32, #tpu.memory_space<vmem>>, vector<1x96xf32>
    %5 = vector.broadcast %4 : vector<1x96xf32> to vector<8x96xf32>
    %6 = arith.addf %3, %5 : vector<8x96xf32>
    %7 = vector.extract_strided_slice %6 {offsets = [0, 0], sizes = [8, 32], strides = [1, 1]} : vector<8x96xf32> to vector<8x32xf32>
    %8 = vector.shape_cast %7 : vector<8x32xf32> to vector<1x8x32xf32>
    %9 = vector.extract_strided_slice %6 {offsets = [0, 32], sizes = [8, 32], strides = [1, 1]} : vector<8x96xf32> to vector<8x32xf32>
    %10 = vector.shape_cast %9 : vector<8x32xf32> to vector<1x8x32xf32>
    %11 = vector.extract_strided_slice %6 {offsets = [0, 64], sizes = [8, 32], strides = [1, 1]} : vector<8x96xf32> to vector<8x32xf32>
    %12 = vector.shape_cast %11 : vector<8x32xf32> to vector<1x8x32xf32>
    %13 = arith.truncf %8 : vector<1x8x32xf32> to vector<1x8x32xbf16>
    %14 = arith.truncf %10 : vector<1x8x32xf32> to vector<1x8x32xbf16>
    "tpu.trace_start"() <{level = 10 : i32, message = "bqe,bke->bqk"}> : () -> ()
    %cst_5 = arith.constant dense<0.000000e+00> : vector<1x8x8xf32>
    %15 = tpu.matmul %13, %14, %cst_5 {dimension_numbers = #tpu.dot_dimension_numbers<[2], [2], [1], [1], [0, 0, 0, 1, 1, 1], [0], [0]>} : vector<1x8x32xbf16>, vector<1x8x32xbf16>, vector<1x8x8xf32> -> vector<1x8x8xf32>
    "tpu.trace_stop"() : () -> ()
    %cst_6 = arith.constant dense<0xFF800000> : vector<1x8xf32>
    %16 = vector.multi_reduction <maximumf>, %15, %cst_6 [2] : vector<1x8x8xf32> to vector<1x8xf32>
    %17 = vector.shape_cast %16 : vector<1x8xf32> to vector<1x8x1xf32>
    %18 = vector.broadcast %17 : vector<1x8x1xf32> to vector<1x8x8xf32>
    %19 = arith.subf %15, %18 : vector<1x8x8xf32>
    %20 = math.exp %19 : vector<1x8x8xf32>
    %cst_7 = arith.constant dense<0.000000e+00> : vector<1x8xf32>
    %21 = vector.multi_reduction <add>, %20, %cst_7 [2] : vector<1x8x8xf32> to vector<1x8xf32>
    %22 = vector.shape_cast %21 : vector<1x8xf32> to vector<1x8x1xf32>
    %23 = tpu.reciprocal %22 {approx = true} : vector<1x8x1xf32> -> vector<1x8x1xf32>
    %24 = vector.broadcast %23 : vector<1x8x1xf32> to vector<1x8x8xf32>
    %25 = arith.mulf %20, %24 : vector<1x8x8xf32>
    %26 = arith.truncf %25 : vector<1x8x8xf32> to vector<1x8x8xbf16>
    %27 = arith.truncf %12 : vector<1x8x32xf32> to vector<1x8x32xbf16>
    "tpu.trace_start"() <{level = 10 : i32, message = "bqk,bke->bqe"}> : () -> ()
    %cst_8 = arith.constant dense<0.000000e+00> : vector<1x8x32xf32>
    %28 = tpu.matmul %26, %27, %cst_8 {dimension_numbers = #tpu.dot_dimension_numbers<[2], [1], [1], [2], [0, 0, 0, 1, 1, 2], [0], [0]>} : vector<1x8x8xbf16>, vector<1x8x32xbf16>, vector<1x8x32xf32> -> vector<1x8x32xf32>
    "tpu.trace_stop"() : () -> ()
    %29 = vector.shape_cast %28 : vector<1x8x32xf32> to vector<8x32xf32>
    %30 = arith.truncf %29 : vector<8x32xf32> to vector<8x32xbf16>
    %c0_9 = arith.constant 0 : index
    %c0_10 = arith.constant 0 : index
    %31 = vector.load %arg4[%c0_9, %c0_10] : memref<32x32xbf16, #tpu.memory_space<vmem>>, vector<32x32xbf16>
    %cst_11 = arith.constant dense<0.000000e+00> : vector<8x32xf32>
    %32 = tpu.matmul %30, %31, %cst_11 {dimension_numbers = #tpu.dot_dimension_numbers<[1], [0], [0], [1], [0, 0, 1, 1], [], []>} : vector<8x32xbf16>, vector<32x32xbf16>, vector<8x32xf32> -> vector<8x32xf32>
    %c0_12 = arith.constant 0 : index
    %c0_13 = arith.constant 0 : index
    %33 = vector.load %arg5[%c0_12, %c0_13] : memref<1x32xf32, #tpu.memory_space<vmem>>, vector<1x32xf32>
    %34 = vector.broadcast %33 : vector<1x32xf32> to vector<8x32xf32>
    %35 = arith.addf %32, %34 : vector<8x32xf32>
    %c0_14 = arith.constant 0 : index
    %c0_15 = arith.constant 0 : index
    %36 = vector.load %arg6[%c0_14, %c0_15] : memref<8x32xf32, #tpu.memory_space<vmem>>, vector<8x32xf32>
    tpu.vector_store %arg6[%c0_14, %c0_15], %35 {strides = array<i32>} : memref<8x32xf32, #tpu.memory_space<vmem>>, vector<8x32xf32>,
    %c0_16 = arith.constant 0 : index
    %c0_17 = arith.constant 0 : index
    %c0_18 = arith.constant 0 : index
    %37 = vector.load %arg7[%c0_16, %c0_17, %c0_18] : memref<1x8x8xf32, #tpu.memory_space<vmem>>, vector<1x8x8xf32>
    tpu.vector_store %arg7[%c0_16, %c0_17, %c0_18], %25 {strides = array<i32>} : memref<1x8x8xf32, #tpu.memory_space<vmem>>, vector<1x8x8xf32>,
    return
  }
  func.func @transform_0(%arg0: i32) -> (i32, i32) {
    %c0_i32 = arith.constant 0 : i32
    %c0_i32_0 = arith.constant 0 : i32
    return %arg0, %c0_i32 : i32, i32
  }
  func.func @transform_1(%arg0: i32) -> (i32, i32) {
    %c0_i32 = arith.constant 0 : i32
    %c0_i32_0 = arith.constant 0 : i32
    %c0_i32_1 = arith.constant 0 : i32
    return %c0_i32, %c0_i32_0 : i32, i32
  }
  func.func @transform_2(%arg0: i32) -> (i32, i32) {
    %c0_i32 = arith.constant 0 : i32
    %c0_i32_0 = arith.constant 0 : i32
    %c0_i32_1 = arith.constant 0 : i32
    return %c0_i32, %c0_i32_0 : i32, i32
  }
  func.func @transform_3(%arg0: i32) -> (i32, i32) {
    %c0_i32 = arith.constant 0 : i32
    %c0_i32_0 = arith.constant 0 : i32
    %c0_i32_1 = arith.constant 0 : i32
    return %c0_i32, %c0_i32_0 : i32, i32
  }
  func.func @transform_4(%arg0: i32) -> (i32, i32) {
    %c0_i32 = arith.constant 0 : i32
    %c0_i32_0 = arith.constant 0 : i32
    %c0_i32_1 = arith.constant 0 : i32
    return %c0_i32, %c0_i32_0 : i32, i32
  }
  func.func @transform_5(%arg0: i32) -> (i32, i32) {
    %c0_i32 = arith.constant 0 : i32
    %c0_i32_0 = arith.constant 0 : i32
    return %arg0, %c0_i32 : i32, i32
  }
  func.func @transform_6(%arg0: i32) -> (i32, i32, i32) {
    %c0_i32 = arith.constant 0 : i32
    %c0_i32_0 = arith.constant 0 : i32
    %c0_i32_1 = arith.constant 0 : i32
    return %arg0, %c0_i32, %c0_i32_0 : i32, i32, i32
  }
}

</mosaic_0001>

<bundles_post_ra>
// kernel: tpu_custom_call.1
= control target key start
LH: loop header
LB: loop body
LE: loop exit
PB: predicated region body
PF: predicated region fallthrough
CT: control target
= control target key end

     0   :  { %12 = vsyncpa [#allocation3], 0  ;;  %s1380_s0 = inlined_call_operand.hbm [shape: f32[16,32], index: 0, kind: input, shape index: {}]   ;;  %s1381_s1 = inlined_call_operand.hbm [shape: bf16[32,96], index: 1, kind: input, shape index: {}]   ;;  %s1382_s2 = inlined_call_operand.vmem [shape: f32[1,96], index: 2, kind: input, shape index: {}]   ;;  %s1383_s3 = inlined_call_operand.hbm [shape: bf16[32,32], index: 3, kind: input, shape index: {}]   ;;  %s1384_s4 = inlined_call_operand.vmem [shape: f32[1,32], index: 4, kind: input, shape index: {}]   ;;  %s1385_s5 = inlined_call_operand.hbm [shape: f32[16,32], index: 5, kind: output, shape index: {0}]   ;;  %s1386_s6 = inlined_call_operand.hbm [shape: f32[2,8,8], index: 6, kind: output, shape index: {1}]  }
   0x1   :  { %14 = vsyncpa [#allocation3 + $0x1], 0 }
   0x2   :  { %15 = vsyncpa [#allocation6], 0 }
   0x3   :  { %16 = vsyncpa [#allocation4], 0 }
   0x4   :  { %18 = vsyncpa [#allocation4 + $0x1], 0 }
   0x5   :  { %19 = vsyncpa [#allocation10], 0 }
   0x6   :  { %21 = vsyncpa [#allocation10 + $0x1], 0  ;;  %s1100_s21 = smov 0   ;;  %s1102_s22 = smov 0  }
   0x7   :  { %s1104_s23 = smov 0   ;;  %s1106_s24 = smov 0  }
   0x8 LB: > { %s1121_s25 = sadd.s32 4294967295, %s1052_s24   ;;  %s711_s26 = sadd.s32 4294967294, %s1052_s24   ;;  %s1052_s24 = sphi %s1106_s24, %s1406_s24   ;;  %s1048_s23 = sphi %s1104_s23, %s1405_s23   ;;  %s1044_s22 = sphi %s1102_s22, %s1404_s22   ;;  %s1040_s21 = sphi %s1100_s21, %s1403_s21  }
   0x9   : > { %p47_p0 = scmp.ne.s32.totalorder %s1044_s22, %s1040_s21  ;;  %p1387_p1 = scmp.eq.s32.totalorder %s1121_s25, 0 }
   0xa   : > { %p161_p3 = scmp.eq.s32.totalorder %s711_s26, 1  ;;  %p712_p5 = scmp.ge.s32.totalorder %s1052_s24, 1 }
   0xb   : > { %p1130_p4 = por %p1387_p1, %p47_p0  ;;  %p194_p7 = scmp.lt.s32.totalorder %s1052_s24, 3 }
   0xc   : > { %p1135_p6 = por %p161_p3, %p47_p0  ;;  %s1054_s30 = smov [#allocation5]  }
   0xd   : > { %s1390_s27 = scalar_select %p1130_p4, 1, 0 }
   0xe   : > { %s1391_s28 = scalar_select %p1135_p6, 1, 0 }
   0xf   : > { %p1140_p8 = pnand %p712_p5, %p194_p7  ;;  %s206_s7 = sshll.u32 %s1054_s30, 4  ;;  %s1144_s7 = int_to_ptr.vmem [resolvable:$true] %s206_s7 }
  0x10   : > { %s1055_s9 = smov [#allocation7]   ;;  %s864_s13 = scalar_lea.hbm %s1381_s1, 256 }
  0x11   : > { %p792_p9 = pneg %p1140_p8  ;;  %s222_s10 = sshll.u32 %s1055_s9, 4  ;;  %s1155_s10 = int_to_ptr.vmem [resolvable:$true] %s222_s10 }
  0x12   : > { %p865_p12 = scmp.ne.s32.totalorder %s1381_s1, %s864_s13  ;;  %p871_p5 = scmp.lt.u32.totalorder %s864_s13, %s1381_s1 }
  0x13   : > { %p1151_p11 = pnand %p792_p9, %p1387_p1 }
  0x15   : > { %p866_p13 = pneg %p1151_p11 }
  0x17   : > { %p867_p0 = pnand %p866_p13, %p865_p12 }
  0x19   : > { %p868_p3 = pneg %p867_p0 }
  0x1b   : > { %p873_p7 = pnand %p871_p5, %p868_p3 }
  0x1d   : > { %876 = shalt.err (!%p873_p7)
}
  0x1e   : > { %s877_s18 = scalar_lea.vmem %s1144_s7, 256  ;;  %p885_p2 = scmp.lt.s32.totalorder %s1144_s7, %s1144_s7 }
  0x1f   : > { %p878_p9 = scmp.ne.s32.totalorder %s1144_s7, %s877_s18  ;;  %p886_p12 = scmp.lt.s32.totalorder %s877_s18, %s877_s18 }
  0x21   : > { %p880_p10 = pnand %p878_p9, %p866_p13  ;;  %p887_p0 = por %p886_p12, %p885_p2 }
  0x23   : > { %p881_p1 = pneg %p880_p10 }
  0x25   : > { %p888_p6 = pnand %p887_p0, %p881_p1 }
  0x27   : > { %891 = shalt.err (!%p888_p6)
}
  0x28   : > { %s1056_s19 = smov 64   ;;  %s1057_s20 = smov 4  }
  0x29   : > { %795 = dma.hbm_to_vmem [thread:$0]  (!%p1151_p11), %s1381_s1, 256, %s1144_s7, [#allocation6], %s1056_s19, %s1056_s19, %s1057_s20  }
  0x2a   : > { %s892_s12 = scalar_lea.hbm %s1383_s3, 256 }
  0x2b   : > { %p893_p2 = scmp.ne.s32.totalorder %s1383_s3, %s892_s12  ;;  %p899_p10 = scmp.lt.u32.totalorder %s892_s12, %s1383_s3 }
  0x2d   : > { %p895_p1 = pnand %p893_p2, %p866_p13 }
  0x2f   : > { %p896_p6 = pneg %p895_p1 }
  0x31   : > { %p901_p3 = pnand %p899_p10, %p896_p6 }
  0x33   : > { %904 = shalt.err (!%p901_p3)
}
  0x34   : > { %s905_s7 = scalar_lea.vmem %s1155_s10, 256  ;;  %p913_p12 = scmp.lt.s32.totalorder %s1155_s10, %s1155_s10 }
  0x35   : > { %p906_p5 = scmp.ne.s32.totalorder %s1155_s10, %s905_s7  ;;  %p914_p0 = scmp.lt.s32.totalorder %s905_s7, %s905_s7 }
  0x37   : > { %p908_p7 = pnand %p906_p5, %p866_p13  ;;  %p915_p2 = por %p914_p0, %p913_p12 }
  0x39   : > { %p909_p9 = pneg %p908_p7 }
  0x3b   : > { %p916_p1 = pnand %p915_p2, %p909_p9 }
  0x3d   : > { %919 = shalt.err (!%p916_p1)
}
  0x3e   : > { %798 = dma.hbm_to_vmem [thread:$0]  (!%p1151_p11), %s1383_s3, 256, %s1155_s10, [#allocation6], %s1056_s19, %s1056_s19, %s1057_s20  }
  0x3f   : > { %s1210_s26 = sadd.s32 1, %s1052_s24   ;;  %s34_s8 = sadd.s32 1, %s1048_s23 }
  0x40   : > { %s31_s30 = ssub.s32 %s1052_s24, %s1210_s26  ;;  %p41_p13 = scmp.ne.s32.totalorder %s1048_s23, %s1044_s22 }
  0x41   : > { %p32_p6 = scmp.eq.s32.totalorder %s31_s30, 0  ;;  %p42_p10 = scmp.eq.s32.totalorder %s1052_s24, 0 }
  0x42   : > { %p1394_p3 = scmp.eq.s32.totalorder %s1121_s25, 1  ;;  %p812_p7 = scmp.lt.s32.totalorder %s1052_s24, 2 }
  0x43   : > { %s1226_s11 = scalar_select %p32_p6, %s1048_s23, %s34_s8  }
  0x44   : > { %p1220_p5 = por %p1394_p3, %p41_p13  ;;  %p43_p9 = por %p42_p10, %p41_p13 }
  0x45   : > { %s239_s12 = sand.u32 1, %s1048_s23   ;;  %s717_s10 = sshll.u32 %s1052_s24, 7 }
  0x46   : > { %s1395_s9 = scalar_select %p1220_p5, 1, 0 }
  0x47   : > { %s716_s13 = sshll.u32 %s239_s12, 3  ;;  %s1233_s14 = scalar_lea.hbm %s1380_s0, %s717_s10 }
  0x48   : > { %s243_s15 = scalar_lea.vmem [#allocation2], %s716_s13  ;;  %p1237_p11 = pnand %p812_p7, %p43_p9 }
  0x49   : > { %s250_s16 = sshll.u32 %s243_s15, 4  ;;  %s240_s17 = scalar_lea.sflag [#allocation3], %s239_s12  ;;  %s1235_s16 = int_to_ptr.vmem [resolvable:$true] %s250_s16 }
  0x4a   : > { %s920_s18 = scalar_lea.hbm %s1233_s14, 128  ;;  %p922_p0 = pneg %p1237_p11 }
  0x4b   : > { %p921_p12 = scmp.ne.s32.totalorder %s1233_s14, %s920_s18  ;;  %s925_s13 = scalar_lea.hbm %s1380_s0, 256 }
  0x4c   : > { %p926_p13 = scmp.lt.u32.totalorder %s1233_s14, %s1380_s0  ;;  %p927_p6 = scmp.lt.u32.totalorder %s925_s13, %s920_s18 }
  0x4d   : > { %p923_p2 = pnand %p922_p0, %p921_p12  ;;  %p929_p3 = scmp.lt.u32.totalorder %s920_s18, %s1233_s14 }
  0x4e   : > { %p928_p10 = por %p927_p6, %p926_p13 }
  0x4f   : > { %p924_p1 = pneg %p923_p2 }
  0x50   : > { %p930_p7 = por %p929_p3, %p928_p10 }
  0x52   : > { %p931_p9 = pnand %p930_p7, %p924_p1 }
  0x54   : > { %934 = shalt.err (!%p931_p9)
}
  0x55   : > { %s935_s12 = scalar_lea.vmem %s1235_s16, 128  ;;  %s1058_s20 = smov [#allocation2]  }
  0x56   : > { %p936_p12 = scmp.ne.s32.totalorder %s1235_s16, %s935_s12  ;;  %s940_s15 = sshll.u32 %s1058_s20, 4  ;;  %s941_s15 = int_to_ptr.vmem [resolvable:$false] %s940_s15 }
  0x57   : > { %s942_s8 = scalar_lea.vmem %s941_s15, 256  ;;  %p943_p4 = scmp.lt.s32.totalorder %s1235_s16, %s941_s15 }
  0x58   : > { %p938_p2 = pnand %p936_p12, %p922_p0  ;;  %p944_p13 = scmp.lt.s32.totalorder %s942_s8, %s935_s12 }
  0x5a   : > { %p939_p5 = pneg %p938_p2  ;;  %p945_p6 = por %p944_p13, %p943_p4 }
  0x5c   : > { %p946_p10 = pnand %p945_p6, %p939_p5 }
  0x5e   : > { %949 = shalt.err (!%p946_p10)
}
  0x5f   : > { %802 = dma.hbm_to_vmem [thread:$0]  (!%p1237_p11), %s1233_s14, 128, %s1235_s16, %s240_s17  }
  0x60   : > { %259 = sbr.rel (%p1140_p8) target bundleno = 1426 (0x592), region = 40  ;;  %s1269_s18 = sand.u32 (!%p1140_p8), 1, %s1044_s22  }
  0x61   : > { %s1272_s30 = sshll.u32 (!%p1140_p8), %s1269_s18, 3  ;;  %s262_s13 = scalar_lea.sflag (!%p1140_p8), [#allocation3], %s1269_s18 }
  0x62   : > { %s265_s10 = scalar_lea.vmem (!%p1140_p8), [#allocation2], %s1272_s30  ;;  %p1397_p4 = scmp.ne.s32.totalorder (!%p1140_p8), %s1390_s27, 0 }
  0x67   : > { %1023 = dma.done.wait (%p1397_p4), %s262_s13, 128  }
  0x68   : > { %1025 = vsyncadd (%p1397_p4), %s262_s13, 4294967168  ;;  %p1398_p5 = scmp.eq.s32.totalorder %s1121_s25, 0 }
  0x6a   : > { %1027 = dma.done.wait (%p1398_p5), [#allocation6], 512   ;;  %p1399_p8 = pmov %p1398_p5 }
  0x6b   : > { %v1059_v0 = vmov 0.0   ;;  %vm1060_vm0 = vmmov 0   ;;  %v856_v1 = vld [vmem:[#allocation5] sm:$0xff]   ;;  %v857_v2 = vld [vmem:[#allocation5 + $0x8] sm:$0xff]   ;;  %v308_v3 = vld [vmem:[%s265_s10] sm:$0xff]  ;;  %vm333_vm1 = vcmask 261120  }
  0x6c   : > { %1029 = vsyncadd (%p1399_p8), [#allocation6], 4294966784  ;;  %750 = vmatprep.subr.bf16.mxu0 %v1059_v0  ;;  %754 = vmatprep.mubr.msk.bf16.mxu0 %vm1060_vm0, %v1059_v0  ;;  %v309_v4 = vpack.c.bf16 %v308_v3, %v308_v3  ;;  %v724_v5 = vld [vmem:[%s1382_s2] ss:$0 sm:$0xff]  ;;  %s1061_s14 = smov 96   ;;  %vm427_vm2 = vcmask 64512  }
  0x6d   : > { %758 = vmatprep.subr.bf16.mxu1 %v1059_v0  ;;  %760 = vmatprep.mubr.msk.bf16.mxu1 %vm1060_vm0, %v1059_v0  ;;  %s1062_s16 = smov 64   ;;  %v858_v24 = vld [vmem:[#allocation7] sm:$0xff]   ;;  %v859_v25 = vld [vmem:[#allocation7 + $0x8] sm:$0xff]   ;;  %vm445_vm3 = vcmask 1043456   ;;  %s306_s7 = scalar_lea.vmem [#allocation9], %s1272_s30 }
  0x6e   : > { %751 = vmatpush3.bf16.msra.mxu0 %v856_v1  ;;  %s736_s17 = sshll.u32 %s1121_s25, 7  ;;  %s590_s15 = sshll.u32 %s306_s7, 4  ;;  %s591_s15 = int_to_ptr.vmem [resolvable:$true] %s590_s15 }
  0x6f   : > { %752 = vmatprep.subr.bf16.mxu0 %v1059_v0  ;;  %s1306_s20 = scalar_lea.hbm %s1386_s6, %s736_s17  ;;  %s564_s8 = scalar_lea.sflag [#allocation10], %s1269_s18 }
  0x70   : > { %s950_s13 = scalar_lea.vmem %s591_s15, 128  ;;  %p1400_p0 = scmp.ne.s32.totalorder %s1395_s9, 0 }
  0x71   : > { %p951_p11 = scmp.ne.s32.totalorder %s591_s15, %s950_s13  ;;  %s1063_s10 = smov [#allocation9]  }
  0x72   : > { %753 = vmatpush3.bf16.msra.mxu0 %v857_v2  ;;  %s954_s27 = sshll.u32 %s1063_s10, 4  ;;  %s955_s27 = int_to_ptr.vmem [resolvable:$false] %s954_s27 }
  0x73   : > { %764 = vmatprep.subr.bf16.mxu0 %v1059_v0  ;;  %p952_p1 = pnand %p951_p11, %p1400_p0  ;;  %s956_s29 = scalar_lea.vmem %s955_s27, 256 }
  0x74   : > { %p957_p7 = scmp.lt.s32.totalorder %s591_s15, %s955_s27  ;;  %p958_p9 = scmp.lt.s32.totalorder %s956_s29, %s950_s13 }
  0x75   : > { %755 = vmatmul.mubr.msk.bf16.vlgmr.msra.gmra.mrb[0].mxu0 %vm333_vm1, %v309_v4  ;;  %p953_p3 = pneg %p952_p1 }
  0x76   : > { %766 = vmatprep.mubr.msk.bf16.mxu0 %vm1060_vm0, %v1059_v0  ;;  %p959_p12 = por %p958_p9, %p957_p7 }
  0x78   : > { %p960_p2 = pnand %p959_p12, %p953_p3 }
 0x148   : > { %v371_v6 = vpop.f32.mrb[0].mxu0 }
 0x149   : > { %v372_v7 = vadd.f32 %v724_v5, %v371_v6  ;;  %v756_v8 = vpop.f32.mrb[1].mxu0 }
 0x14a   : > { %v374_v9 = vpop.f32.mrb[2].mxu0 }
 0x14b   : > { %v377_v10 = vpack.c.bf16 %v372_v7, %v372_v7  ;;  %v757_v11 = vpop.f32.mrb[3].mxu0 }
 0x14d   : > { %379 = vrot.lane.b32.xlu0 %v377_v10, %s1061_s14 }
 0x1bf   : > { %v380_v12 = vpop.permute.xlu0 %379 }
 0x1c0   : > { %v385_v13 = vsel %vm333_vm1, %v380_v12, 0 }
 0x1c1   : > { %759 = vmatpush3.bf16.xpose.msra.mxu1 %v385_v13 }
 0x1c2   : > { %770 = vmatprep.subr.bf16.mxu1 %v1059_v0 }
 0x1c8   : > { %761 = vmatmul.mubr.msk.bf16.vlgmr.msra.gmra.mrb[0].mxu1 %vm333_vm1, %v377_v10 }
 0x1c9   : > { %774 = vmatprep.mubr.msk.bf16.mxu1 %vm1060_vm0, %v1059_v0  ;;  %771 = vmatpush3.bf16.msra.mxu1 %v858_v24 }
 0x1ca   : > { %772 = vmatprep.subr.bf16.mxu1 %v1059_v0 }
 0x1cd   : > { %773 = vmatpush3.bf16.msra.mxu1 %v859_v25 }
 0x29b   : > { %v421_v14 = vpop.f32.mrb[0].mxu1 }
 0x29c   : > { %v762_v15 = vpop.f32.mrb[1].mxu1  ;;  %v428_v16 = vsel %vm427_vm2, %v421_v14, -inf }
 0x29d   : > { %429 = vmax.xlane.f32.xlu0 %v428_v16  ;;  %v424_v17 = vpop.f32.mrb[2].mxu1 }
 0x29e   : > { %v763_v18 = vpop.f32.mrb[3].mxu1 }
 0x32a   : > { %v430_v19 = vpop.xlane.xlu0 %429 }
 0x32b   : > { %v431_v20 = vsub.f32 %v421_v14, %v430_v19 }
 0x32d   : > { %v432_v21 = vmul.f32 1.442695, %v431_v20 }
 0x32f   : > { %860 = vpow2.f32 %v432_v21 }
 0x339   : > { %v861_v22 = vpop.eup %860 }
 0x33a   : > { %v434_v23 = vsel %vm427_vm2, %v861_v22, 0.0 }
 0x33b   : > { %435 = vadd.xlane.f32.xlu1 %v434_v23 }
 0x34c   : > { %440 = vrot.lane.b32.xlu1 %v377_v10, %s1062_s16 }
 0x3c8   : > { %v436_v26 = vpop.xlane.xlu1 %435 }
 0x3c9   : > { %862 = vrcp.f32 %v436_v26 }
 0x3cc   : > { %v441_v27 = vpop.permute.xlu1 %440 }
 0x3cd   : > { %v447_v28 = vsel %vm445_vm3, %v441_v27, 0 }
 0x3ce   : > { %765 = vmatpush3.bf16.msra.mxu0 %v447_v28 }
 0x3d3   : > { %v863_v29 = vpop.eup %862 }
 0x3d4   : > { %v438_v30 = vmul.f32 %v863_v29, %v861_v22 }
 0x3d6   : > { %v439_v31 = vpack.c.bf16 %v438_v30, %v438_v30  ;;  %557 = vst.msk [vmem:[%s306_s7] sm:$0xff] %vm427_vm2, %v438_v30 }
 0x3d8   : > { %767 = vmatmul.mubr.msk.bf16.vlgmr.msra.gmra.mrb[4].mxu0 %vm427_vm2, %v439_v31 }
 0x4ab   : > { %v483_v32 = vpop.f32.mrb[4].mxu0 }
 0x4ac   : > { %v489_v33 = vpack.c.bf16 %v483_v32, %v483_v32  ;;  %v768_v34 = vpop.f32.mrb[5].mxu0 }
 0x4ad   : > { %v486_v35 = vpop.f32.mrb[6].mxu0 }
 0x4ae   : > { %v769_v36 = vpop.f32.mrb[7].mxu0  ;;  %775 = vmatmul.mubr.msk.bf16.vlgmr.msra.gmra.mrb[4].mxu1 %vm333_vm1, %v489_v33 }
 0x4af   : > { %963 = shalt.err (!%p960_p2)
}
 0x4b0   : > { %s964_s14 = scalar_lea.hbm %s1306_s20, 128  ;;  %s968_s19 = scalar_lea.hbm %s1386_s6, 256 }
 0x4b1   : > { %p965_p13 = scmp.ne.s32.totalorder %s1306_s20, %s964_s14  ;;  %p969_p4 = scmp.lt.u32.totalorder %s1306_s20, %s1386_s6 }
 0x4b2   : > { %p970_p5 = scmp.lt.u32.totalorder %s968_s19, %s964_s14  ;;  %p972_p11 = scmp.lt.u32.totalorder %s964_s14, %s1306_s20 }
 0x4b3   : > { %p966_p6 = pnand %p965_p13, %p1400_p0 }
 0x4b4   : > { %p971_p8 = por %p970_p5, %p969_p4 }
 0x4b5   : > { %p967_p10 = pneg %p966_p6 }
 0x4b6   : > { %p973_p1 = por %p972_p11, %p971_p8 }
 0x4b8   : > { %p974_p3 = pnand %p973_p1, %p967_p10 }
 0x4ba   : > { %977 = shalt.err (!%p974_p3)
}
 0x4bb   : > { %789 = dma.vmem_to_hbm [thread:$0]  (%p1400_p0), %s591_s15, 128, %s1306_s20, %s564_s8   ;;  %v730_v37 = vld [vmem:[%s1384_s4] ss:$0 sm:$0xff] }
 0x4bc   : > { %s299_s29 = scalar_lea.vmem [#allocation8], %s1272_s30  ;;  %s1335_s19 = scalar_lea.hbm %s1385_s5, %s736_s17 }
 0x4bd   : > { %s577_s16 = sshll.u32 %s299_s29, 4  ;;  %s559_s30 = scalar_lea.sflag [#allocation4], %s1269_s18  ;;  %s1337_s16 = int_to_ptr.vmem [resolvable:$true] %s577_s16 }
 0x4be   : > { %s978_s20 = scalar_lea.vmem %s1337_s16, 128  ;;  %s1064_s25 = smov [#allocation8]  }
 0x4bf   : > { %p979_p7 = scmp.ne.s32.totalorder %s1337_s16, %s978_s20  ;;  %s982_s15 = sshll.u32 %s1064_s25, 4  ;;  %s983_s15 = int_to_ptr.vmem [resolvable:$false] %s982_s15 }
 0x4c0   : > { %s984_s17 = scalar_lea.vmem %s983_s15, 256  ;;  %p985_p2 = scmp.lt.s32.totalorder %s1337_s16, %s983_s15 }
 0x4c1   : > { %p980_p9 = pnand %p979_p7, %p1400_p0  ;;  %p986_p13 = scmp.lt.s32.totalorder %s984_s17, %s978_s20 }
 0x4c3   : > { %p981_p12 = pneg %p980_p9  ;;  %p987_p6 = por %p986_p13, %p985_p2 }
 0x4c5   : > { %p988_p10 = pnand %p987_p6, %p981_p12 }
 0x581   : > { %v550_v38 = vpop.f32.mrb[4].mxu1 }
 0x582   : > { %v551_v39 = vadd.f32 %v730_v37, %v550_v38  ;;  %v776_v40 = vpop.f32.mrb[5].mxu1 }
 0x583   : > { %v553_v41 = vpop.f32.mrb[6].mxu1 }
 0x584   : > { %v777_v42 = vpop.f32.mrb[7].mxu1  ;;  %556 = vst.msk [vmem:[%s299_s29] sm:$0xff] %vm333_vm1, %v551_v39 }
 0x585   : > { %991 = shalt.err (!%p988_p10)
}
 0x586   : > { %s992_s18 = scalar_lea.hbm %s1335_s19, 128  ;;  %s996_s10 = scalar_lea.hbm %s1385_s5, 256 }
 0x587   : > { %p993_p4 = scmp.ne.s32.totalorder %s1335_s19, %s992_s18  ;;  %p997_p11 = scmp.lt.u32.totalorder %s1335_s19, %s1385_s5 }
 0x588   : > { %p998_p1 = scmp.lt.u32.totalorder %s996_s10, %s992_s18  ;;  %p1000_p7 = scmp.lt.u32.totalorder %s992_s18, %s1335_s19 }
 0x589   : > { %p994_p5 = pnand %p993_p4, %p1400_p0 }
 0x58a   : > { %p999_p3 = por %p998_p1, %p997_p11 }
 0x58b   : > { %p995_p8 = pneg %p994_p5 }
 0x58c   : > { %p1001_p9 = por %p1000_p7, %p999_p3 }
 0x58e   : > { %p1002_p12 = pnand %p1001_p9, %p995_p8 }
 0x590   : > { %1005 = shalt.err (!%p1002_p12)
}
 0x591   : > { %788 = dma.vmem_to_hbm [thread:$0]  (%p1400_p0), %s1337_s16, 128, %s1335_s19, %s559_s30  }
 0x592 PF: > { %s602_s29 = sand.u32 1, %s1040_s21   ;;  %p1401_p2 = scmp.ne.s32.totalorder %s1391_s28, 0 }
 0x593   : > { %p1402_p13 = scmp.ge.s32.totalorder %s1052_s24, 2  ;;  %s603_s14 = scalar_lea.sflag [#allocation4], %s602_s29 }
 0x595   : > { %p804_p6 = pnand %p1402_p13, %p1401_p2 }
 0x597   : > { %1031 = dma.done.wait (!%p804_p6), %s603_s14, 128  }
 0x598   : > { %1033 = vsyncadd (!%p804_p6), %s603_s14, 4294967168  ;;  %s612_s7 = scalar_lea.sflag [#allocation10], %s602_s29 }
 0x599   : > { %1035 = dma.done.wait (!%p804_p6), %s612_s7, 128  }
 0x59a   : > { %1037 = vsyncadd (!%p804_p6), %s612_s7, 4294967168  ;;  %p24_p0 = scmp.ge.s32.totalorder %s1210_s26, 4   ;;  %s1403_s21 = smov %s1044_s22 }
 0x59b   : > { %s1404_s22 = smov %s1048_s23  ;;  %s1405_s23 = smov %s1226_s11 }
 0x59c   : > { %s1406_s24 = smov %s1210_s26  ;;  %26 = sbr.rel (!%p24_p0) target bundleno = 8 (0x8), region = 110 }
 0x5a3   :  { %617 = vsyncpa [#allocation3], 1 }
 0x5a4   :  { %619 = vsyncpa [#allocation3 + $0x1], 1 }
 0x5a5   :  { %620 = vsyncpa [#allocation6], 1 }
 0x5a6   :  { %621 = vsyncpa [#allocation4], 1 }
 0x5a7   :  { %623 = vsyncpa [#allocation4 + $0x1], 1 }
 0x5a8   :  { %624 = vsyncpa [#allocation10], 1 }
 0x5a9   :  { %626 = vsyncpa [#allocation10 + $0x1], 1 }

// kernel: tpu_custom_call.1
= control target key start
LH: loop header
LB: loop body
LE: loop exit
PB: predicated region body
PF: predicated region fallthrough
CT: control target
= control target key end

     0   :  { %12 = vsyncpa [#allocation3], 0  ;;  %s1380_s0 = inlined_call_operand.hbm [shape: f32[16,32], index: 0, kind: input, shape index: {}]   ;;  %s1381_s1 = inlined_call_operand.hbm [shape: bf16[32,96], index: 1, kind: input, shape index: {}]   ;;  %s1382_s2 = inlined_call_operand.vmem [shape: f32[1,96], index: 2, kind: input, shape index: {}]   ;;  %s1383_s3 = inlined_call_operand.hbm [shape: bf16[32,32], index: 3, kind: input, shape index: {}]   ;;  %s1384_s4 = inlined_call_operand.vmem [shape: f32[1,32], index: 4, kind: input, shape index: {}]   ;;  %s1385_s5 = inlined_call_operand.hbm [shape: f32[16,32], index: 5, kind: output, shape index: {0}]   ;;  %s1386_s6 = inlined_call_operand.hbm [shape: f32[2,8,8], index: 6, kind: output, shape index: {1}]  }
   0x1   :  { %14 = vsyncpa [#allocation3 + $0x1], 0 }
   0x2   :  { %15 = vsyncpa [#allocation6], 0 }
   0x3   :  { %16 = vsyncpa [#allocation4], 0 }
   0x4   :  { %18 = vsyncpa [#allocation4 + $0x1], 0 }
   0x5   :  { %19 = vsyncpa [#allocation10], 0 }
   0x6   :  { %21 = vsyncpa [#allocation10 + $0x1], 0  ;;  %s1100_s21 = smov 0   ;;  %s1102_s22 = smov 0  }
   0x7   :  { %s1104_s23 = smov 0   ;;  %s1106_s24 = smov 0  }
   0x8 LB: > { %s1121_s25 = sadd.s32 4294967295, %s1052_s24   ;;  %s711_s26 = sadd.s32 4294967294, %s1052_s24   ;;  %s1052_s24 = sphi %s1106_s24, %s1406_s24   ;;  %s1048_s23 = sphi %s1104_s23, %s1405_s23   ;;  %s1044_s22 = sphi %s1102_s22, %s1404_s22   ;;  %s1040_s21 = sphi %s1100_s21, %s1403_s21  }
   0x9   : > { %p47_p0 = scmp.ne.s32.totalorder %s1044_s22, %s1040_s21  ;;  %p1387_p1 = scmp.eq.s32.totalorder %s1121_s25, 0 }
   0xa   : > { %p161_p3 = scmp.eq.s32.totalorder %s711_s26, 1  ;;  %p712_p5 = scmp.ge.s32.totalorder %s1052_s24, 1 }
   0xb   : > { %p1130_p4 = por %p1387_p1, %p47_p0  ;;  %p194_p7 = scmp.lt.s32.totalorder %s1052_s24, 3 }
   0xc   : > { %p1135_p6 = por %p161_p3, %p47_p0  ;;  %s1054_s30 = smov [#allocation5]  }
   0xd   : > { %s1390_s27 = scalar_select %p1130_p4, 1, 0 }
   0xe   : > { %s1391_s28 = scalar_select %p1135_p6, 1, 0 }
   0xf   : > { %p1140_p8 = pnand %p712_p5, %p194_p7  ;;  %s206_s7 = sshll.u32 %s1054_s30, 4  ;;  %s1144_s7 = int_to_ptr.vmem [resolvable:$true] %s206_s7 }
  0x10   : > { %s1055_s9 = smov [#allocation7]   ;;  %s864_s13 = scalar_lea.hbm %s1381_s1, 256 }
  0x11   : > { %p792_p9 = pneg %p1140_p8  ;;  %s222_s10 = sshll.u32 %s1055_s9, 4  ;;  %s1155_s10 = int_to_ptr.vmem [resolvable:$true] %s222_s10 }
  0x12   : > { %p865_p12 = scmp.ne.s32.totalorder %s1381_s1, %s864_s13  ;;  %p871_p5 = scmp.lt.u32.totalorder %s864_s13, %s1381_s1 }
  0x13   : > { %p1151_p11 = pnand %p792_p9, %p1387_p1 }
  0x15   : > { %p866_p13 = pneg %p1151_p11 }
  0x17   : > { %p867_p0 = pnand %p866_p13, %p865_p12 }
  0x19   : > { %p868_p3 = pneg %p867_p0 }
  0x1b   : > { %p873_p7 = pnand %p871_p5, %p868_p3 }
  0x1d   : > { %876 = shalt.err (!%p873_p7)
}
  0x1e   : > { %s877_s18 = scalar_lea.vmem %s1144_s7, 256  ;;  %p885_p2 = scmp.lt.s32.totalorder %s1144_s7, %s1144_s7 }
  0x1f   : > { %p878_p9 = scmp.ne.s32.totalorder %s1144_s7, %s877_s18  ;;  %p886_p12 = scmp.lt.s32.totalorder %s877_s18, %s877_s18 }
  0x21   : > { %p880_p10 = pnand %p878_p9, %p866_p13  ;;  %p887_p0 = por %p886_p12, %p885_p2 }
  0x23   : > { %p881_p1 = pneg %p880_p10 }
  0x25   : > { %p888_p6 = pnand %p887_p0, %p881_p1 }
  0x27   : > { %891 = shalt.err (!%p888_p6)
}
  0x28   : > { %s1056_s19 = smov 64   ;;  %s1057_s20 = smov 4  }
  0x29   : > { %795 = dma.hbm_to_vmem [thread:$0]  (!%p1151_p11), %s1381_s1, 256, %s1144_s7, [#allocation6], %s1056_s19, %s1056_s19, %s1057_s20  }
  0x2a   : > { %s892_s12 = scalar_lea.hbm %s1383_s3, 256 }
  0x2b   : > { %p893_p2 = scmp.ne.s32.totalorder %s1383_s3, %s892_s12  ;;  %p899_p10 = scmp.lt.u32.totalorder %s892_s12, %s1383_s3 }
  0x2d   : > { %p895_p1 = pnand %p893_p2, %p866_p13 }
  0x2f   : > { %p896_p6 = pneg %p895_p1 }
  0x31   : > { %p901_p3 = pnand %p899_p10, %p896_p6 }
  0x33   : > { %904 = shalt.err (!%p901_p3)
}
  0x34   : > { %s905_s7 = scalar_lea.vmem %s1155_s10, 256  ;;  %p913_p12 = scmp.lt.s32.totalorder %s1155_s10, %s1155_s10 }
  0x35   : > { %p906_p5 = scmp.ne.s32.totalorder %s1155_s10, %s905_s7  ;;  %p914_p0 = scmp.lt.s32.totalorder %s905_s7, %s905_s7 }
  0x37   : > { %p908_p7 = pnand %p906_p5, %p866_p13  ;;  %p915_p2 = por %p914_p0, %p913_p12 }
  0x39   : > { %p909_p9 = pneg %p908_p7 }
  0x3b   : > { %p916_p1 = pnand %p915_p2, %p909_p9 }
  0x3d   : > { %919 = shalt.err (!%p916_p1)
}
  0x3e   : > { %798 = dma.hbm_to_vmem [thread:$0]  (!%p1151_p11), %s1383_s3, 256, %s1155_s10, [#allocation6], %s1056_s19, %s1056_s19, %s1057_s20  }
  0x3f   : > { %s1210_s26 = sadd.s32 1, %s1052_s24   ;;  %s34_s8 = sadd.s32 1, %s1048_s23 }
  0x40   : > { %s31_s30 = ssub.s32 %s1052_s24, %s1210_s26  ;;  %p41_p13 = scmp.ne.s32.totalorder %s1048_s23, %s1044_s22 }
  0x41   : > { %p32_p6 = scmp.eq.s32.totalorder %s31_s30, 0  ;;  %p42_p10 = scmp.eq.s32.totalorder %s1052_s24, 0 }
  0x42   : > { %p1394_p3 = scmp.eq.s32.totalorder %s1121_s25, 1  ;;  %p812_p7 = scmp.lt.s32.totalorder %s1052_s24, 2 }
  0x43   : > { %s1226_s11 = scalar_select %p32_p6, %s1048_s23, %s34_s8  }
  0x44   : > { %p1220_p5 = por %p1394_p3, %p41_p13  ;;  %p43_p9 = por %p42_p10, %p41_p13 }
  0x45   : > { %s239_s12 = sand.u32 1, %s1048_s23   ;;  %s717_s10 = sshll.u32 %s1052_s24, 7 }
  0x46   : > { %s1395_s9 = scalar_select %p1220_p5, 1, 0 }
  0x47   : > { %s716_s13 = sshll.u32 %s239_s12, 3  ;;  %s1233_s14 = scalar_lea.hbm %s1380_s0, %s717_s10 }
  0x48   : > { %s243_s15 = scalar_lea.vmem [#allocation2], %s716_s13  ;;  %p1237_p11 = pnand %p812_p7, %p43_p9 }
  0x49   : > { %s250_s16 = sshll.u32 %s243_s15, 4  ;;  %s240_s17 = scalar_lea.sflag [#allocation3], %s239_s12  ;;  %s1235_s16 = int_to_ptr.vmem [resolvable:$true] %s250_s16 }
  0x4a   : > { %s920_s18 = scalar_lea.hbm %s1233_s14, 128  ;;  %p922_p0 = pneg %p1237_p11 }
  0x4b   : > { %p921_p12 = scmp.ne.s32.totalorder %s1233_s14, %s920_s18  ;;  %s925_s13 = scalar_lea.hbm %s1380_s0, 256 }
  0x4c   : > { %p926_p13 = scmp.lt.u32.totalorder %s1233_s14, %s1380_s0  ;;  %p927_p6 = scmp.lt.u32.totalorder %s925_s13, %s920_s18 }
  0x4d   : > { %p923_p2 = pnand %p922_p0, %p921_p12  ;;  %p929_p3 = scmp.lt.u32.totalorder %s920_s18, %s1233_s14 }
  0x4e   : > { %p928_p10 = por %p927_p6, %p926_p13 }
  0x4f   : > { %p924_p1 = pneg %p923_p2 }
  0x50   : > { %p930_p7 = por %p929_p3, %p928_p10 }
  0x52   : > { %p931_p9 = pnand %p930_p7, %p924_p1 }
  0x54   : > { %934 = shalt.err (!%p931_p9)
}
  0x55   : > { %s935_s12 = scalar_lea.vmem %s1235_s16, 128  ;;  %s1058_s20 = smov [#allocation2]  }
  0x56   : > { %p936_p12 = scmp.ne.s32.totalorder %s1235_s16, %s935_s12  ;;  %s940_s15 = sshll.u32 %s1058_s20, 4  ;;  %s941_s15 = int_to_ptr.vmem [resolvable:$false] %s940_s15 }
  0x57   : > { %s942_s8 = scalar_lea.vmem %s941_s15, 256  ;;  %p943_p4 = scmp.lt.s32.totalorder %s1235_s16, %s941_s15 }
  0x58   : > { %p938_p2 = pnand %p936_p12, %p922_p0  ;;  %p944_p13 = scmp.lt.s32.totalorder %s942_s8, %s935_s12 }
  0x5a   : > { %p939_p5 = pneg %p938_p2  ;;  %p945_p6 = por %p944_p13, %p943_p4 }
  0x5c   : > { %p946_p10 = pnand %p945_p6, %p939_p5 }
  0x5e   : > { %949 = shalt.err (!%p946_p10)
}
  0x5f   : > { %802 = dma.hbm_to_vmem [thread:$0]  (!%p1237_p11), %s1233_s14, 128, %s1235_s16, %s240_s17  }
  0x60   : > { %259 = sbr.rel (%p1140_p8) target bundleno = 1426 (0x592), region = 40  ;;  %s1269_s18 = sand.u32 (!%p1140_p8), 1, %s1044_s22  }
  0x61   : > { %s1272_s30 = sshll.u32 (!%p1140_p8), %s1269_s18, 3  ;;  %s262_s13 = scalar_lea.sflag (!%p1140_p8), [#allocation3], %s1269_s18 }
  0x62   : > { %s265_s10 = scalar_lea.vmem (!%p1140_p8), [#allocation2], %s1272_s30  ;;  %p1397_p4 = scmp.ne.s32.totalorder (!%p1140_p8), %s1390_s27, 0 }
  0x67   : > { %1023 = dma.done.wait (%p1397_p4), %s262_s13, 128  }
  0x68   : > { %1025 = vsyncadd (%p1397_p4), %s262_s13, 4294967168  ;;  %p1398_p5 = scmp.eq.s32.totalorder %s1121_s25, 0 }
  0x6a   : > { %1027 = dma.done.wait (%p1398_p5), [#allocation6], 512   ;;  %p1399_p8 = pmov %p1398_p5 }
  0x6b   : > { %v1059_v0 = vmov 0.0   ;;  %vm1060_vm0 = vmmov 0   ;;  %v856_v1 = vld [vmem:[#allocation5] sm:$0xff]   ;;  %v857_v2 = vld [vmem:[#allocation5 + $0x8] sm:$0xff]   ;;  %v308_v3 = vld [vmem:[%s265_s10] sm:$0xff]  ;;  %vm333_vm1 = vcmask 261120  }
  0x6c   : > { %1029 = vsyncadd (%p1399_p8), [#allocation6], 4294966784  ;;  %750 = vmatprep.subr.bf16.mxu0 %v1059_v0  ;;  %754 = vmatprep.mubr.msk.bf16.mxu0 %vm1060_vm0, %v1059_v0  ;;  %v309_v4 = vpack.c.bf16 %v308_v3, %v308_v3  ;;  %v724_v5 = vld [vmem:[%s1382_s2] ss:$0 sm:$0xff]  ;;  %s1061_s14 = smov 96   ;;  %vm427_vm2 = vcmask 64512  }
  0x6d   : > { %758 = vmatprep.subr.bf16.mxu1 %v1059_v0  ;;  %760 = vmatprep.mubr.msk.bf16.mxu1 %vm1060_vm0, %v1059_v0  ;;  %s1062_s16 = smov 64   ;;  %v858_v24 = vld [vmem:[#allocation7] sm:$0xff]   ;;  %v859_v25 = vld [vmem:[#allocation7 + $0x8] sm:$0xff]   ;;  %vm445_vm3 = vcmask 1043456   ;;  %s306_s7 = scalar_lea.vmem [#allocation9], %s1272_s30 }
  0x6e   : > { %751 = vmatpush3.bf16.msra.mxu0 %v856_v1  ;;  %s736_s17 = sshll.u32 %s1121_s25, 7  ;;  %s590_s15 = sshll.u32 %s306_s7, 4  ;;  %s591_s15 = int_to_ptr.vmem [resolvable:$true] %s590_s15 }
  0x6f   : > { %752 = vmatprep.subr.bf16.mxu0 %v1059_v0  ;;  %s1306_s20 = scalar_lea.hbm %s1386_s6, %s736_s17  ;;  %s564_s8 = scalar_lea.sflag [#allocation10], %s1269_s18 }
  0x70   : > { %s950_s13 = scalar_lea.vmem %s591_s15, 128  ;;  %p1400_p0 = scmp.ne.s32.totalorder %s1395_s9, 0 }
  0x71   : > { %p951_p11 = scmp.ne.s32.totalorder %s591_s15, %s950_s13  ;;  %s1063_s10 = smov [#allocation9]  }
  0x72   : > { %753 = vmatpush3.bf16.msra.mxu0 %v857_v2  ;;  %s954_s27 = sshll.u32 %s1063_s10, 4  ;;  %s955_s27 = int_to_ptr.vmem [resolvable:$false] %s954_s27 }
  0x73   : > { %764 = vmatprep.subr.bf16.mxu0 %v1059_v0  ;;  %p952_p1 = pnand %p951_p11, %p1400_p0  ;;  %s956_s29 = scalar_lea.vmem %s955_s27, 256 }
  0x74   : > { %p957_p7 = scmp.lt.s32.totalorder %s591_s15, %s955_s27  ;;  %p958_p9 = scmp.lt.s32.totalorder %s956_s29, %s950_s13 }
  0x75   : > { %755 = vmatmul.mubr.msk.bf16.vlgmr.msra.gmra.mrb[0].mxu0 %vm333_vm1, %v309_v4  ;;  %p953_p3 = pneg %p952_p1 }
  0x76   : > { %766 = vmatprep.mubr.msk.bf16.mxu0 %vm1060_vm0, %v1059_v0  ;;  %p959_p12 = por %p958_p9, %p957_p7 }
  0x78   : > { %p960_p2 = pnand %p959_p12, %p953_p3 }
 0x148   : > { %v371_v6 = vpop.f32.mrb[0].mxu0 }
 0x149   : > { %v372_v7 = vadd.f32 %v724_v5, %v371_v6  ;;  %v756_v8 = vpop.f32.mrb[1].mxu0 }
 0x14a   : > { %v374_v9 = vpop.f32.mrb[2].mxu0 }
 0x14b   : > { %v377_v10 = vpack.c.bf16 %v372_v7, %v372_v7  ;;  %v757_v11 = vpop.f32.mrb[3].mxu0 }
 0x14d   : > { %379 = vrot.lane.b32.xlu0 %v377_v10, %s1061_s14 }
 0x1bf   : > { %v380_v12 = vpop.permute.xlu0 %379 }
 0x1c0   : > { %v385_v13 = vsel %vm333_vm1, %v380_v12, 0 }
 0x1c1   : > { %759 = vmatpush3.bf16.xpose.msra.mxu1 %v385_v13 }
 0x1c2   : > { %770 = vmatprep.subr.bf16.mxu1 %v1059_v0 }
 0x1c8   : > { %761 = vmatmul.mubr.msk.bf16.vlgmr.msra.gmra.mrb[0].mxu1 %vm333_vm1, %v377_v10 }
 0x1c9   : > { %774 = vmatprep.mubr.msk.bf16.mxu1 %vm1060_vm0, %v1059_v0  ;;  %771 = vmatpush3.bf16.msra.mxu1 %v858_v24 }
 0x1ca   : > { %772 = vmatprep.subr.bf16.mxu1 %v1059_v0 }
 0x1cd   : > { %773 = vmatpush3.bf16.msra.mxu1 %v859_v25 }
 0x29b   : > { %v421_v14 = vpop.f32.mrb[0].mxu1 }
 0x29c   : > { %v762_v15 = vpop.f32.mrb[1].mxu1  ;;  %v428_v16 = vsel %vm427_vm2, %v421_v14, -inf }
 0x29d   : > { %429 = vmax.xlane.f32.xlu0 %v428_v16  ;;  %v424_v17 = vpop.f32.mrb[2].mxu1 }
 0x29e   : > { %v763_v18 = vpop.f32.mrb[3].mxu1 }
 0x32a   : > { %v430_v19 = vpop.xlane.xlu0 %429 }
 0x32b   : > { %v431_v20 = vsub.f32 %v421_v14, %v430_v19 }
 0x32d   : > { %v432_v21 = vmul.f32 1.442695, %v431_v20 }
 0x32f   : > { %860 = vpow2.f32 %v432_v21 }
 0x339   : > { %v861_v22 = vpop.eup %860 }
 0x33a   : > { %v434_v23 = vsel %vm427_vm2, %v861_v22, 0.0 }
 0x33b   : > { %435 = vadd.xlane.f32.xlu1 %v434_v23 }
 0x34c   : > { %440 = vrot.lane.b32.xlu1 %v377_v10, %s1062_s16 }
 0x3c8   : > { %v436_v26 = vpop.xlane.xlu1 %435 }
 0x3c9   : > { %862 = vrcp.f32 %v436_v26 }
 0x3cc   : > { %v441_v27 = vpop.permute.xlu1 %440 }
 0x3cd   : > { %v447_v28 = vsel %vm445_vm3, %v441_v27, 0 }
 0x3ce   : > { %765 = vmatpush3.bf16.msra.mxu0 %v447_v28 }
 0x3d3   : > { %v863_v29 = vpop.eup %862 }
 0x3d4   : > { %v438_v30 = vmul.f32 %v863_v29, %v861_v22 }
 0x3d6   : > { %v439_v31 = vpack.c.bf16 %v438_v30, %v438_v30  ;;  %557 = vst.msk [vmem:[%s306_s7] sm:$0xff] %vm427_vm2, %v438_v30 }
 0x3d8   : > { %767 = vmatmul.mubr.msk.bf16.vlgmr.msra.gmra.mrb[4].mxu0 %vm427_vm2, %v439_v31 }
 0x4ab   : > { %v483_v32 = vpop.f32.mrb[4].mxu0 }
 0x4ac   : > { %v489_v33 = vpack.c.bf16 %v483_v32, %v483_v32  ;;  %v768_v34 = vpop.f32.mrb[5].mxu0 }
 0x4ad   : > { %v486_v35 = vpop.f32.mrb[6].mxu0 }
 0x4ae   : > { %v769_v36 = vpop.f32.mrb[7].mxu0  ;;  %775 = vmatmul.mubr.msk.bf16.vlgmr.msra.gmra.mrb[4].mxu1 %vm333_vm1, %v489_v33 }
 0x4af   : > { %963 = shalt.err (!%p960_p2)
}
 0x4b0   : > { %s964_s14 = scalar_lea.hbm %s1306_s20, 128  ;;  %s968_s19 = scalar_lea.hbm %s1386_s6, 256 }
 0x4b1   : > { %p965_p13 = scmp.ne.s32.totalorder %s1306_s20, %s964_s14  ;;  %p969_p4 = scmp.lt.u32.totalorder %s1306_s20, %s1386_s6 }
 0x4b2   : > { %p970_p5 = scmp.lt.u32.totalorder %s968_s19, %s964_s14  ;;  %p972_p11 = scmp.lt.u32.totalorder %s964_s14, %s1306_s20 }
 0x4b3   : > { %p966_p6 = pnand %p965_p13, %p1400_p0 }
 0x4b4   : > { %p971_p8 = por %p970_p5, %p969_p4 }
 0x4b5   : > { %p967_p10 = pneg %p966_p6 }
 0x4b6   : > { %p973_p1 = por %p972_p11, %p971_p8 }
 0x4b8   : > { %p974_p3 = pnand %p973_p1, %p967_p10 }
 0x4ba   : > { %977 = shalt.err (!%p974_p3)
}
 0x4bb   : > { %789 = dma.vmem_to_hbm [thread:$0]  (%p1400_p0), %s591_s15, 128, %s1306_s20, %s564_s8   ;;  %v730_v37 = vld [vmem:[%s1384_s4] ss:$0 sm:$0xff] }
 0x4bc   : > { %s299_s29 = scalar_lea.vmem [#allocation8], %s1272_s30  ;;  %s1335_s19 = scalar_lea.hbm %s1385_s5, %s736_s17 }
 0x4bd   : > { %s577_s16 = sshll.u32 %s299_s29, 4  ;;  %s559_s30 = scalar_lea.sflag [#allocation4], %s1269_s18  ;;  %s1337_s16 = int_to_ptr.vmem [resolvable:$true] %s577_s16 }
 0x4be   : > { %s978_s20 = scalar_lea.vmem %s1337_s16, 128  ;;  %s1064_s25 = smov [#allocation8]  }
 0x4bf   : > { %p979_p7 = scmp.ne.s32.totalorder %s1337_s16, %s978_s20  ;;  %s982_s15 = sshll.u32 %s1064_s25, 4  ;;  %s983_s15 = int_to_ptr.vmem [resolvable:$false] %s982_s15 }
 0x4c0   : > { %s984_s17 = scalar_lea.vmem %s983_s15, 256  ;;  %p985_p2 = scmp.lt.s32.totalorder %s1337_s16, %s983_s15 }
 0x4c1   : > { %p980_p9 = pnand %p979_p7, %p1400_p0  ;;  %p986_p13 = scmp.lt.s32.totalorder %s984_s17, %s978_s20 }
 0x4c3   : > { %p981_p12 = pneg %p980_p9  ;;  %p987_p6 = por %p986_p13, %p985_p2 }
 0x4c5   : > { %p988_p10 = pnand %p987_p6, %p981_p12 }
 0x581   : > { %v550_v38 = vpop.f32.mrb[4].mxu1 }
 0x582   : > { %v551_v39 = vadd.f32 %v730_v37, %v550_v38  ;;  %v776_v40 = vpop.f32.mrb[5].mxu1 }
 0x583   : > { %v553_v41 = vpop.f32.mrb[6].mxu1 }
 0x584   : > { %v777_v42 = vpop.f32.mrb[7].mxu1  ;;  %556 = vst.msk [vmem:[%s299_s29] sm:$0xff] %vm333_vm1, %v551_v39 }
 0x585   : > { %991 = shalt.err (!%p988_p10)
}
 0x586   : > { %s992_s18 = scalar_lea.hbm %s1335_s19, 128  ;;  %s996_s10 = scalar_lea.hbm %s1385_s5, 256 }
 0x587   : > { %p993_p4 = scmp.ne.s32.totalorder %s1335_s19, %s992_s18  ;;  %p997_p11 = scmp.lt.u32.totalorder %s1335_s19, %s1385_s5 }
 0x588   : > { %p998_p1 = scmp.lt.u32.totalorder %s996_s10, %s992_s18  ;;  %p1000_p7 = scmp.lt.u32.totalorder %s992_s18, %s1335_s19 }
 0x589   : > { %p994_p5 = pnand %p993_p4, %p1400_p0 }
 0x58a   : > { %p999_p3 = por %p998_p1, %p997_p11 }
 0x58b   : > { %p995_p8 = pneg %p994_p5 }
 0x58c   : > { %p1001_p9 = por %p1000_p7, %p999_p3 }
 0x58e   : > { %p1002_p12 = pnand %p1001_p9, %p995_p8 }
 0x590   : > { %1005 = shalt.err (!%p1002_p12)
}
 0x591   : > { %788 = dma.vmem_to_hbm [thread:$0]  (%p1400_p0), %s1337_s16, 128, %s1335_s19, %s559_s30  }
 0x592 PF: > { %s602_s29 = sand.u32 1, %s1040_s21   ;;  %p1401_p2 = scmp.ne.s32.totalorder %s1391_s28, 0 }
 0x593   : > { %p1402_p13 = scmp.ge.s32.totalorder %s1052_s24, 2  ;;  %s603_s14 = scalar_lea.sflag [#allocation4], %s602_s29 }
 0x595   : > { %p804_p6 = pnand %p1402_p13, %p1401_p2 }
 0x597   : > { %1031 = dma.done.wait (!%p804_p6), %s603_s14, 128  }
 0x598   : > { %1033 = vsyncadd (!%p804_p6), %s603_s14, 4294967168  ;;  %s612_s7 = scalar_lea.sflag [#allocation10], %s602_s29 }
 0x599   : > { %1035 = dma.done.wait (!%p804_p6), %s612_s7, 128  }
 0x59a   : > { %1037 = vsyncadd (!%p804_p6), %s612_s7, 4294967168  ;;  %p24_p0 = scmp.ge.s32.totalorder %s1210_s26, 4   ;;  %s1403_s21 = smov %s1044_s22 }
 0x59b   : > { %s1404_s22 = smov %s1048_s23  ;;  %s1405_s23 = smov %s1226_s11 }
 0x59c   : > { %s1406_s24 = smov %s1210_s26  ;;  %26 = sbr.rel (!%p24_p0) target bundleno = 8 (0x8), region = 110 }
 0x5a3   :  { %617 = vsyncpa [#allocation3], 1 }
 0x5a4   :  { %619 = vsyncpa [#allocation3 + $0x1], 1 }
 0x5a5   :  { %620 = vsyncpa [#allocation6], 1 }
 0x5a6   :  { %621 = vsyncpa [#allocation4], 1 }
 0x5a7   :  { %623 = vsyncpa [#allocation4 + $0x1], 1 }
 0x5a8   :  { %624 = vsyncpa [#allocation10], 1 }
 0x5a9   :  { %626 = vsyncpa [#allocation10 + $0x1], 1 }

</bundles_post_ra>
